<compile_context>
chip_gen: v7x
topology: tpu7x:2x2x1
jax: 0.10.0
libtpu: 0.0.40
codegen_flags: <defaults>
</compile_context>

<pallas_src>
import jax
import jax.numpy as jnp
from jax.experimental import pallas as pl
from jax.experimental.pallas import tpu as pltpu


def _round_up(x, m):
    return ((x + m - 1) // m) * m


def _cdiv(a, b):
    return (a + b - 1) // b


# Abramowitz & Stegun 7.1.26 rational erf approximation (|err| < 1.5e-7).
_ERF_A1, _ERF_A2, _ERF_A3 = 0.254829592, -0.284496736, 1.421413741
_ERF_A4, _ERF_A5, _ERF_P = -1.453152027, 1.061405429, 0.3275911


def _erf_from_t(au, t):
    poly = ((((_ERF_A5 * t + _ERF_A4) * t + _ERF_A3) * t + _ERF_A2) * t + _ERF_A1) * t
    return 1.0 - poly * jnp.exp(-au * au)


def _gelu_exact_kernel(x):
    # Exact-form (erf) GELU, in-kernel variant: the 1/(1 + p|u|) divide goes to
    # the EUP slot via pl.reciprocal(approx=True) so it overlaps VPU/MXU work.
    u = x * 0.7071067811865476
    au = jnp.abs(u)
    t = pl.reciprocal(1.0 + _ERF_P * au, approx=True)
    y = _erf_from_t(au, t)
    erf = jnp.where(u < 0.0, -y, y)
    return 0.5 * x * (1.0 + erf)


def _gelu_exact_ref(x):
    # Plain-JAX reference version (exact divide), same rational approximation.
    u = x * 0.7071067811865476
    au = jnp.abs(u)
    t = 1.0 / (1.0 + _ERF_P * au)
    y = _erf_from_t(au, t)
    erf = jnp.where(u < 0.0, -y, y)
    return 0.5 * x * (1.0 + erf)


def _encode_kernel(x_ref, w1_ref, b1_ref, w2_ref, b2_ref, z_ref):
    # x_ref: (tm, K)  bf16    w1: (K, Hp) bf16   b1: (1, Hp) f32
    # w2: (Hp, P) bf16        b2: (1, P)  f32    z:  (tm, P)  f32  (unpadded!)
    x = x_ref[...]
    h = jnp.dot(x, w1_ref[...], preferred_element_type=jnp.float32)   # MXU, f32 acc
    h = h + b1_ref[...]                                               # f32 VPU
    h = _gelu_exact_kernel(h)                                         # VPU + EUP
    h = h.astype(w2_ref.dtype)                                        # bf16 for 2nd MXU pass
    z = jnp.dot(h, w2_ref[...], preferred_element_type=jnp.float32)   # MXU, f32 acc
    z = z + b2_ref[...]
    z_ref[...] = z.astype(z_ref.dtype)                                # only real P columns hit HBM


def encode_images_pallas(x_nchw, w1, b1, w2, b2, *, patch=4, tm=2048):
    """vision_encoder.forward + vision_encoder.proj fused.

    tm: token-tile rows per grid step. Per-step VMEM is only ~1-2 MiB at these
    widths, so 2048-4096 fits comfortably on all generations (incl. v7x 64 MiB);
    it is auto-clamped so the grid keeps >= 2 steps for v7x megacore sharding.
    """
    B, C, H, W = x_nchw.shape
    ph = pw = patch
    assert H % ph == 0 and W % pw == 0  # TODO(synk): no padding path for ragged H/W
    nh, nw = H // ph, W // pw

    # Patchify: [B, C, nh, ph, nw, pw] -> [B*nh*nw, C*ph*pw], materialized as a
    # standalone XLA transpose+cast so the kernel's x DMA is one contiguous
    # (tm, K) chunk (avoids 16-byte strided descriptors from fusing it in).
    xp = x_nchw.reshape(B, C, nh, ph, nw, pw)
    xp = jnp.transpose(xp, (0, 2, 4, 1, 3, 5)).reshape(B * nh * nw, C * ph * pw)
    xp = xp.astype(jnp.bfloat16)

    M, K = xp.shape
    Hd = w1.shape[1]
    b1 = jnp.asarray(b1).reshape(1, -1)   # accept PyTorch-style 1-D biases
    b2 = jnp.asarray(b2).reshape(1, -1)
    P = w2.shape[1]

    # Pad only the *hidden* lane dim to 128 (full-width MXU tiles for the first
    # matmul); it lives in VMEM only. The output/proj dim P is NOT padded: the
    # kernel writes only the real P columns to HBM.  K is never padded.
    LANE = 128
    Hp = _round_up(Hd, LANE)
    w1p = jnp.zeros((K, Hp), jnp.bfloat16).at[:, :Hd].set(w1.astype(jnp.bfloat16))
    b1p = jnp.zeros((1, Hp), jnp.float32).at[:, :Hd].set(b1.astype(jnp.float32))
    w2p = jnp.zeros((Hp, P), jnp.bfloat16).at[:Hd, :].set(w2.astype(jnp.bfloat16))
    b2p = b2.astype(jnp.float32)

    # Token tile: multiple of 16 (bf16 sublane packing); clamp to the problem
    # size, then clamp further so the grid has >= 2 steps when M permits
    # (otherwise dimension_semantics=("parallel",) can't shard over v7x's 2 TCs).
    tm_eff = _round_up(min(tm, _round_up(M, 16)), 16)
    if M > 16 and _cdiv(M, tm_eff) < 2:
        tm_eff = _round_up(_cdiv(M, 2), 16)
    Mp = _round_up(M, tm_eff)

    xb = xp
    if Mp != M:
        xb = jnp.pad(xb, ((0, Mp - M), (0, 0)))

    grid = (Mp // tm_eff,)

    # VMEM budget from the chosen tile: double-buffered x / out tiles, resident
    # (double-buffered) weights, f32 intermediates, plus headroom.
    # Capped at 48 MiB to leave compiler scratch headroom on v7x (64 MiB phys).
    needed = (
        2 * tm_eff * K * 2                                   # x tile, bf16, 2 bufs
        + 2 * tm_eff * P * 4                                 # out tile, f32, 2 bufs
        + 2 * (K * Hp * 2 + Hp * 4 + Hp * P * 2 + P * 4)     # weights/biases
        + 2 * tm_eff * Hp * 4                                # h + GELU temporaries
    )
    vmem_limit = min(max(needed + (8 << 20), 16 << 20), 48 << 20)

    z_flat = pl.pallas_call(
        _encode_kernel,
        out_shape=jax.ShapeDtypeStruct((Mp, P), jnp.float32),
        grid=grid,
        in_specs=[
            pl.BlockSpec((tm_eff, K), lambda i: (i, 0)),   # stream token tiles
            pl.BlockSpec((K, Hp), lambda i: (0, 0)),       # weights: VMEM-resident
            pl.BlockSpec((1, Hp), lambda i: (0, 0)),
            pl.BlockSpec((Hp, P), lambda i: (0, 0)),
            pl.BlockSpec((1, P), lambda i: (0, 0)),
        ],
        out_specs=pl.BlockSpec((tm_eff, P), lambda i: (i, 0)),
        compiler_params=pltpu.CompilerParams(
            dimension_semantics=("parallel",),             # shard M over TCs (v7x)
            vmem_limit_bytes=int(vmem_limit),
        ),
    )(xb, w1p, b1p, w2p, b2p)

    # Padded rows (x=0 rows still pick up GELU(b1)·w2 + b2) must be dropped;
    # when Mp == M (typical: M multiple of 16) this whole path is a free reshape.
    if Mp != M:
        z_flat = z_flat[:M]
    return z_flat.reshape(B, nh * nw, P)


def decode_images(z):
    # self.sampler = nn.Identity()
    return z


def lang_classifier_forward():
    # The PyTorch LangClassifier.forward() body is `return` -> None.
    return None


if __name__ == "__main__":
    key = jax.random.PRNGKey(0)
    kx, k1, k2 = jax.random.split(key, 3)

    # Small shapes consistent with the module's NCHW image input.
    # NOTE: at this size plain XLA fusion would beat any kernel; these shapes
    # are for correctness only — tune/benchmark at realistic B/H/W.
    B, C, H, W = 2, 4, 16, 16
    patch = 4
    patch_dim = C * patch * patch    # 64
    hidden = 32                      # vision_encoder width
    proj_dim = 32                    # vision_encoder.proj output width

    x = jax.random.normal(kx, (B, C, H, W), dtype=jnp.float32)

    # Deterministic synthetic parameters (no checkpoint load).
    w1 = jax.random.normal(k1, (patch_dim, hidden), dtype=jnp.float32) * 0.02
    b1 = jnp.zeros((hidden,), dtype=jnp.float32)      # PyTorch-style 1-D bias
    w2 = jax.random.normal(k2, (hidden, proj_dim), dtype=jnp.float32) * 0.02
    b2 = jnp.zeros((proj_dim,), dtype=jnp.float32)

    # encode_images -> decode_images (Identity)
    z = encode_images_pallas(x, w1, b1, w2, b2, patch=patch)
    z = decode_images(z)
    z = jax.block_until_ready(z)

    # Reference in plain JAX with matching bf16-operand / f32-accumulate math.
    nh, nw = H // patch, W // patch
    xp = jnp.transpose(
        x.reshape(B, C, nh, patch, nw, patch), (0, 2, 4, 1, 3, 5)
    ).reshape(B * nh * nw, patch_dim)
    h_ref = jnp.dot(xp.astype(jnp.bfloat16), w1.astype(jnp.bfloat16),
                    preferred_element_type=jnp.float32) + b1.reshape(1, -1)
    h_ref = _gelu_exact_ref(h_ref).astype(jnp.bfloat16)
    z_ref = jnp.dot(h_ref, w2.astype(jnp.bfloat16),
                    preferred_element_type=jnp.float32) + b2.reshape(1, -1)
    z_ref = z_ref.reshape(B, nh * nw, proj_dim)

    assert z.shape == (B, nh * nw, proj_dim)
    assert jnp.allclose(z, z_ref, atol=2e-3, rtol=2e-3), float(jnp.max(jnp.abs(z - z_ref)))

    # LangClassifier.forward() itself returns None.
    assert lang_classifier_forward() is None

    print("KERNEL_OK")
</pallas_src>

<mosaic_0001>
module attributes {stable_mosaic.version = 11 : i64} {
  func.func @_encode_kernel(%arg0: i32, %arg1: memref<16x64xbf16, #tpu.memory_space<vmem>>, %arg2: memref<64x128xbf16, #tpu.memory_space<vmem>>, %arg3: memref<1x128xf32, #tpu.memory_space<vmem>>, %arg4: memref<128x32xbf16, #tpu.memory_space<vmem>>, %arg5: memref<1x32xf32, #tpu.memory_space<vmem>>, %arg6: memref<16x32xf32, #tpu.memory_space<vmem>>) attributes {dimension_semantics = [#tpu.dimension_semantics<parallel>], iteration_bounds = array<i64: 2>, scalar_prefetch = 0 : i64, scratch_operands = 0 : i64, tpu.core_type = #tpu.core_type<tc>, window_params = [{transform_indices = @transform_0, window_bounds = array<i64: 16, 64>}, {pipeline_mode = #tpu.pipeline_mode<synchronous>, transform_indices = @transform_1, window_bounds = array<i64: 64, 128>}, {pipeline_mode = #tpu.pipeline_mode<synchronous>, transform_indices = @transform_2, window_bounds = array<i64: 1, 128>}, {pipeline_mode = #tpu.pipeline_mode<synchronous>, transform_indices = @transform_3, window_bounds = array<i64: 128, 32>}, {pipeline_mode = #tpu.pipeline_mode<synchronous>, transform_indices = @transform_4, window_bounds = array<i64: 1, 32>}, {transform_indices = @transform_5, window_bounds = array<i64: 16, 32>}]} {
    %c0 = arith.constant 0 : index
    %c0_0 = arith.constant 0 : index
    %0 = vector.load %arg1[%c0, %c0_0] : memref<16x64xbf16, #tpu.memory_space<vmem>>, vector<16x64xbf16>
    %c0_1 = arith.constant 0 : index
    %c0_2 = arith.constant 0 : index
    %1 = vector.load %arg2[%c0_1, %c0_2] : memref<64x128xbf16, #tpu.memory_space<vmem>>, vector<64x128xbf16>
    %cst = arith.constant dense<0.000000e+00> : vector<16x128xf32>
    %2 = tpu.matmul %0, %1, %cst {dimension_numbers = #tpu.dot_dimension_numbers<[1], [0], [0], [1], [0, 0, 1, 1], [], []>} : vector<16x64xbf16>, vector<64x128xbf16>, vector<16x128xf32> -> vector<16x128xf32>
    %c0_3 = arith.constant 0 : index
    %c0_4 = arith.constant 0 : index
    %3 = vector.load %arg3[%c0_3, %c0_4] : memref<1x128xf32, #tpu.memory_space<vmem>>, vector<1x128xf32>
    %4 = vector.broadcast %3 : vector<1x128xf32> to vector<16x128xf32>
    %5 = arith.addf %2, %4 : vector<16x128xf32>
    %cst_5 = arith.constant 0.707106769 : f32
    %6 = vector.broadcast %cst_5 : f32 to vector<16x128xf32>
    %7 = arith.mulf %5, %6 : vector<16x128xf32>
    %8 = math.absf %7 : vector<16x128xf32>
    %cst_6 = arith.constant 0.327591091 : f32
    %9 = vector.broadcast %cst_6 : f32 to vector<16x128xf32>
    %10 = arith.mulf %9, %8 : vector<16x128xf32>
    %cst_7 = arith.constant 1.000000e+00 : f32
    %11 = vector.broadcast %cst_7 : f32 to vector<16x128xf32>
    %12 = arith.addf %11, %10 : vector<16x128xf32>
    %13 = tpu.reciprocal %12 {approx = true} : vector<16x128xf32> -> vector<16x128xf32>
    %cst_8 = arith.constant 1.06140542 : f32
    %14 = vector.broadcast %cst_8 : f32 to vector<16x128xf32>
    %15 = arith.mulf %14, %13 : vector<16x128xf32>
    %cst_9 = arith.constant -1.45315206 : f32
    %16 = vector.broadcast %cst_9 : f32 to vector<16x128xf32>
    %17 = arith.addf %15, %16 : vector<16x128xf32>
    %18 = arith.mulf %17, %13 : vector<16x128xf32>
    %cst_10 = arith.constant 1.42141378 : f32
    %19 = vector.broadcast %cst_10 : f32 to vector<16x128xf32>
    %20 = arith.addf %18, %19 : vector<16x128xf32>
    %21 = arith.mulf %20, %13 : vector<16x128xf32>
    %cst_11 = arith.constant -0.284496725 : f32
    %22 = vector.broadcast %cst_11 : f32 to vector<16x128xf32>
    %23 = arith.addf %21, %22 : vector<16x128xf32>
    %24 = arith.mulf %23, %13 : vector<16x128xf32>
    %cst_12 = arith.constant 0.254829586 : f32
    %25 = vector.broadcast %cst_12 : f32 to vector<16x128xf32>
    %26 = arith.addf %24, %25 : vector<16x128xf32>
    %27 = arith.mulf %26, %13 : vector<16x128xf32>
    %cst_13 = arith.constant 0.000000e+00 : f32
    %28 = vector.broadcast %cst_13 : f32 to vector<16x128xf32>
    %29 = arith.subf %28, %8 : vector<16x128xf32>
    %30 = arith.mulf %29, %8 : vector<16x128xf32>
    %31 = math.exp %30 : vector<16x128xf32>
    %32 = arith.mulf %27, %31 : vector<16x128xf32>
    %cst_14 = arith.constant 1.000000e+00 : f32
    %33 = vector.broadcast %cst_14 : f32 to vector<16x128xf32>
    %34 = arith.subf %33, %32 : vector<16x128xf32>
    %cst_15 = arith.constant 0.000000e+00 : f32
    %35 = vector.broadcast %cst_15 : f32 to vector<16x128xf32>
    %36 = arith.cmpf olt, %7, %35 : vector<16x128xf32>
    %cst_16 = arith.constant 0.000000e+00 : f32
    %37 = vector.broadcast %cst_16 : f32 to vector<16x128xf32>
    %38 = arith.subf %37, %34 : vector<16x128xf32>
    %39 = arith.select %36, %38, %34 : vector<16x128xi1>, vector<16x128xf32>
    %cst_17 = arith.constant 5.000000e-01 : f32
    %40 = vector.broadcast %cst_17 : f32 to vector<16x128xf32>
    %41 = arith.mulf %40, %5 : vector<16x128xf32>
    %cst_18 = arith.constant 1.000000e+00 : f32
    %42 = vector.broadcast %cst_18 : f32 to vector<16x128xf32>
    %43 = arith.addf %42, %39 : vector<16x128xf32>
    %44 = arith.mulf %41, %43 : vector<16x128xf32>
    %45 = arith.truncf %44 : vector<16x128xf32> to vector<16x128xbf16>
    %c0_19 = arith.constant 0 : index
    %c0_20 = arith.constant 0 : index
    %46 = vector.load %arg4[%c0_19, %c0_20] : memref<128x32xbf16, #tpu.memory_space<vmem>>, vector<128x32xbf16>
    %cst_21 = arith.constant dense<0.000000e+00> : vector<16x32xf32>
    %47 = tpu.matmul %45, %46, %cst_21 {dimension_numbers = #tpu.dot_dimension_numbers<[1], [0], [0], [1], [0, 0, 1, 1], [], []>} : vector<16x128xbf16>, vector<128x32xbf16>, vector<16x32xf32> -> vector<16x32xf32>
    %c0_22 = arith.constant 0 : index
    %c0_23 = arith.constant 0 : index
    %48 = vector.load %arg5[%c0_22, %c0_23] : memref<1x32xf32, #tpu.memory_space<vmem>>, vector<1x32xf32>
    %49 = vector.broadcast %48 : vector<1x32xf32> to vector<16x32xf32>
    %50 = arith.addf %47, %49 : vector<16x32xf32>
    %c0_24 = arith.constant 0 : index
    %c0_25 = arith.constant 0 : index
    %51 = vector.load %arg6[%c0_24, %c0_25] : memref<16x32xf32, #tpu.memory_space<vmem>>, vector<16x32xf32>
    tpu.vector_store %arg6[%c0_24, %c0_25], %50 {strides = array<i32>} : memref<16x32xf32, #tpu.memory_space<vmem>>, vector<16x32xf32>,
    return
  }
  func.func @transform_0(%arg0: i32) -> (i32, i32) {
    %c0_i32 = arith.constant 0 : i32
    %c0_i32_0 = arith.constant 0 : i32
    return %arg0, %c0_i32 : i32, i32
  }
  func.func @transform_1(%arg0: i32) -> (i32, i32) {
    %c0_i32 = arith.constant 0 : i32
    %c0_i32_0 = arith.constant 0 : i32
    %c0_i32_1 = arith.constant 0 : i32
    return %c0_i32, %c0_i32_0 : i32, i32
  }
  func.func @transform_2(%arg0: i32) -> (i32, i32) {
    %c0_i32 = arith.constant 0 : i32
    %c0_i32_0 = arith.constant 0 : i32
    %c0_i32_1 = arith.constant 0 : i32
    return %c0_i32, %c0_i32_0 : i32, i32
  }
  func.func @transform_3(%arg0: i32) -> (i32, i32) {
    %c0_i32 = arith.constant 0 : i32
    %c0_i32_0 = arith.constant 0 : i32
    %c0_i32_1 = arith.constant 0 : i32
    return %c0_i32, %c0_i32_0 : i32, i32
  }
  func.func @transform_4(%arg0: i32) -> (i32, i32) {
    %c0_i32 = arith.constant 0 : i32
    %c0_i32_0 = arith.constant 0 : i32
    %c0_i32_1 = arith.constant 0 : i32
    return %c0_i32, %c0_i32_0 : i32, i32
  }
  func.func @transform_5(%arg0: i32) -> (i32, i32) {
    %c0_i32 = arith.constant 0 : i32
    %c0_i32_0 = arith.constant 0 : i32
    return %arg0, %c0_i32 : i32, i32
  }
}

</mosaic_0001>

<bundles_post_ra>
// kernel: tpu_custom_call.1
= control target key start
LH: loop header
LB: loop body
LE: loop exit
PB: predicated region body
PF: predicated region fallthrough
CT: control target
= control target key end

     0   :  { %10 = vsyncpa [#allocation3], 0  ;;  %s944_s0 = inlined_call_operand.vmem [shape: bf16[32,64], index: 0, kind: input, shape index: {}]   ;;  %s945_s1 = inlined_call_operand.vmem [shape: bf16[64,128], index: 1, kind: input, shape index: {}]   ;;  %s946_s2 = inlined_call_operand.vmem [shape: f32[1,128], index: 2, kind: input, shape index: {}]   ;;  %s947_s3 = inlined_call_operand.vmem [shape: bf16[128,32], index: 3, kind: input, shape index: {}]   ;;  %s948_s4 = inlined_call_operand.vmem [shape: f32[1,32], index: 4, kind: input, shape index: {}]   ;;  %s949_s5 = inlined_call_operand.hbm [shape: f32[32,32], index: 5, kind: output, shape index: {}]  }
   0x1   :  { %12 = vsyncpa [#allocation3 + $0x1], 0  ;;  %s800_s18 = smov 0   ;;  %s802_s19 = smov 0  }
   0x2   :  { %s804_s20 = smov 0   ;;  %s806_s21 = smov 0  }
   0x3 LB: > { %s821_s22 = sadd.s32 4294967295, %s763_s21   ;;  %s562_s23 = sadd.s32 4294967294, %s763_s21   ;;  %s763_s21 = sphi %s806_s21, %s955_s21   ;;  %s759_s20 = sphi %s804_s20, %s954_s20   ;;  %s755_s19 = sphi %s802_s19, %s953_s19   ;;  %s751_s18 = sphi %s800_s18, %s952_s18  }
   0x4   : > { %s825_s24 = sadd.s32 1, %s763_s21   ;;  %s135_s25 = sadd.s32 1, %s759_s20 }
   0x5   : > { %s132_s26 = ssub.s32 %s763_s21, %s825_s24  ;;  %p145_p0 = scmp.ne.s32.totalorder %s759_s20, %s755_s19 }
   0x6   : > { %p133_p1 = scmp.eq.s32.totalorder %s132_s26, 0  ;;  %p146_p2 = scmp.eq.s32.totalorder %s821_s22, 1 }
   0x7   : > { %p151_p3 = scmp.ne.s32.totalorder %s755_s19, %s751_s18  ;;  %p152_p4 = scmp.eq.s32.totalorder %s562_s23, 1 }
   0x8   : > { %s836_s27 = scalar_select %p133_p1, %s759_s20, %s135_s25  }
   0x9   : > { %p838_p5 = por %p146_p2, %p145_p0  ;;  %p842_p6 = por %p152_p4, %p151_p3 }
   0xa   : > { %p565_p7 = scmp.ge.s32.totalorder %s763_s21, 1  ;;  %p191_p8 = scmp.lt.s32.totalorder %s763_s21, 3 }
   0xc   : > { %p192_p9 = pnand %p565_p7, %p191_p8 }
   0xd   : > { %v680_v0 = vld [vmem:[%s945_s1] sm:$0xff] (!%p192_p9)   ;;  %v765_v1 = vmov (!%p192_p9), 0.0   ;;  %v681_v2 = vld [vmem:[%s945_s1 + $0x8] sm:$0xff] (!%p192_p9)   ;;  %vm766_vm0 = vmmov (!%p192_p9), 0   ;;  %s567_s9 = sshll.u32 (!%p192_p9), %s821_s22, 1  ;;  %v682_v3 = vld [vmem:[%s945_s1 + $0x10] sm:$0xff] (!%p192_p9)  }
   0xe   : > { %195 = sbr.rel (%p192_p9) target bundleno = 527 (0x20f), region = 40  ;;  %605 = vmatprep.subr.bf16.mxu0 (!%p192_p9), %v765_v1  ;;  %617 = vmatprep.subr.bf16.mxu1 (!%p192_p9), %v765_v1  ;;  %p220_p10 = scmp.lt.s32.totalorder (!%p192_p9), %s567_s9, 3  ;;  %v683_v4 = vld [vmem:[%s945_s1 + $0x18] sm:$0xff] (!%p192_p9)   ;;  %vm273_vm1 = vcmask (!%p192_p9), 523264   ;;  %v685_v6 = vld [vmem:[%s947_s3] sm:$0xff] (!%p192_p9)   ;;  %v686_v7 = vld [vmem:[%s947_s3 + $0x8] sm:$0xff] (!%p192_p9)  }
   0xf   : > { %606 = vmatpush3.bf16.msra.mxu0 (!%p192_p9), %v680_v0  ;;  %613 = vmatprep.mubr.msk.bf16.mxu0 (!%p192_p9), %vm766_vm0, %v765_v1  ;;  %v687_v8 = vld [vmem:[%s947_s3 + $0x10] sm:$0xff] (!%p192_p9)   ;;  %v688_v9 = vld [vmem:[%s947_s3 + $0x18] sm:$0xff] (!%p192_p9)   ;;  %v689_v10 = vld [vmem:[%s947_s3 + $0x20] sm:$0xff] (!%p192_p9)   ;;  %s216_s26 = sand.u32 (!%p192_p9), 1, %s755_s19   ;;  %s590_s10 = sshll.u32 (!%p192_p9), %s821_s22, 8  ;;  %vm483_vm4 = vcmask (!%p192_p9), 261120  }
  0x10   : > { %607 = vmatprep.subr.bf16.mxu0 (!%p192_p9), %v765_v1  ;;  %633 = vmatprep.mubr.msk.bf16.mxu1 (!%p192_p9), %vm766_vm0, %v765_v1  ;;  %v690_v11 = vld [vmem:[%s947_s3 + $0x28] sm:$0xff] (!%p192_p9)   ;;  %v691_v12 = vld [vmem:[%s947_s3 + $0x30] sm:$0xff] (!%p192_p9)   ;;  %v692_v13 = vld [vmem:[%s947_s3 + $0x38] sm:$0xff] (!%p192_p9)   ;;  %s566_s30 = sshll.u32 (!%p192_p9), %s216_s26, 4  ;;  %s901_s13 = scalar_lea.hbm (!%p192_p9), %s949_s5, %s590_s10 }
  0x11   : > { %618 = vmatpush3.bf16.msra.mxu1 (!%p192_p9), %v685_v6  ;;  %v569_v14 = vld [vmem:[%s946_s2] ss:$0 sm:$0xff] (!%p192_p9)  ;;  %s218_s8 = scalar_lea.vmem (!%p192_p9), [#allocation2], %s566_s30  ;;  %s903_s22 = scalar_lea.sflag (!%p192_p9), [#allocation3], %s216_s26 }
  0x12   : > { %619 = vmatprep.subr.bf16.mxu1 (!%p192_p9), %v765_v1 }
  0x13   : > { %608 = vmatpush3.bf16.msra.mxu0 (!%p192_p9), %v681_v2 }
  0x14   : > { %609 = vmatprep.subr.bf16.mxu0 (!%p192_p9), %v765_v1 }
  0x15   : > { %s957_s9 = smov (!%p220_p10, %s567_s9), 3  ;;  %620 = vmatpush3.bf16.msra.mxu1 %v686_v7 }
  0x16   : > { %s568_s12 = sshll.u32 %s957_s9, 2  ;;  %621 = vmatprep.subr.bf16.mxu1 %v765_v1  ;;  %s500_s9 = sshll.u32 %s218_s8, 4  ;;  %s896_s9 = int_to_ptr.vmem [resolvable:$true] %s500_s9 }
  0x17   : > { %s223_s15 = scalar_lea.vmem %s944_s0, %s568_s12  ;;  %610 = vmatpush3.bf16.msra.mxu0 %v682_v3  ;;  %s701_s14 = scalar_lea.vmem %s896_s9, 256 }
  0x18   : > { %611 = vmatprep.subr.bf16.mxu0 %v765_v1  ;;  %v684_v5 = vld [vmem:[%s223_s15] sm:$0xff]   ;;  %p702_p11 = scmp.ne.s32.totalorder %s896_s9, %s701_s14  ;;  %s767_s15 = smov [#allocation2]  }
  0x19   : > { %622 = vmatpush3.bf16.msra.mxu1 %v687_v8  ;;  %v576_v8 = vld [vmem:[%s948_s4] ss:$0 sm:$0xff]  ;;  %s705_s16 = sshll.u32 %s767_s15, 4  ;;  %s706_s16 = int_to_ptr.vmem [resolvable:$false] %s705_s16 }
  0x1a   : > { %623 = vmatprep.subr.bf16.mxu1 %v765_v1  ;;  %p703_p12 = pnand %p702_p11, %p838_p5  ;;  %s707_s17 = scalar_lea.vmem %s706_s16, 512 }
  0x1b   : > { %612 = vmatpush3.bf16.msra.mxu0 %v683_v4  ;;  %p708_p0 = scmp.lt.s32.totalorder %s896_s9, %s706_s16  ;;  %p709_p1 = scmp.lt.s32.totalorder %s707_s17, %s701_s14 }
  0x1c   : > { %p704_p13 = pneg %p703_p12 }
  0x1d   : > { %624 = vmatpush3.bf16.msra.mxu1 %v688_v9  ;;  %p710_p2 = por %p709_p1, %p708_p0 }
  0x1e   : > { %614 = vmatmul.mubr.msk.bf16.vlgmr.msra.gmra.mrb[0].mxu0 %vm273_vm1, %v684_v5  ;;  %625 = vmatprep.subr.bf16.mxu1 %v765_v1 }
  0x1f   : > { %p711_p3 = pnand %p710_p2, %p704_p13 }
  0x21   : > { %626 = vmatpush3.bf16.msra.mxu1 %v689_v10 }
  0x22   : > { %627 = vmatprep.subr.bf16.mxu1 %v765_v1 }
  0x25   : > { %628 = vmatpush3.bf16.msra.mxu1 %v690_v11 }
  0x26   : > { %629 = vmatprep.subr.bf16.mxu1 %v765_v1 }
  0x29   : > { %630 = vmatpush3.bf16.msra.mxu1 %v691_v12 }
  0x2a   : > { %631 = vmatprep.subr.bf16.mxu1 %v765_v1 }
  0x2d   : > { %632 = vmatpush3.bf16.msra.mxu1 %v692_v13 }
  0xf1   : > { %v311_v15 = vpop.f32.mrb[0].mxu0 }
  0xf2   : > { %v312_v16 = vadd.f32 %v569_v14, %v311_v15  ;;  %v615_v17 = vpop.f32.mrb[1].mxu0 }
  0xf3   : > { %v314_v18 = vpop.f32.mrb[2].mxu0 }
  0xf4   : > { %v318_v19 = vmul.f32 0.70710677, %v312_v16  ;;  %v315_v20 = vadd.f32 %v569_v14, %v314_v18  ;;  %v616_v21 = vpop.f32.mrb[3].mxu0  ;;  %v364_v2 = vmul.f32 0.5, %v312_v16 }
  0xf6   : > { %v320_v22 = vand.u32 2147483647, %v318_v19  ;;  %v319_v23 = vmul.f32 0.70710677, %v315_v20  ;;  %vm358_vm2 = vcmp.lt.f32.partialorder %v318_v19, 0.0  ;;  %v365_v3 = vmul.f32 0.5, %v315_v20 }
  0xf8   : > { %v322_v24 = vmul.f32 0.3275911, %v320_v22  ;;  %v321_v25 = vand.u32 2147483647, %v319_v23  ;;  %v346_v29 = vsub.f32 0.0, %v320_v22  ;;  %vm359_vm3 = vcmp.lt.f32.partialorder %v319_v23, 0.0 }
  0xfa   : > { %v324_v26 = vadd.f32 1.0, %v322_v24  ;;  %v323_v27 = vmul.f32 0.3275911, %v321_v25  ;;  %v347_v30 = vsub.f32 0.0, %v321_v25  ;;  %v348_v32 = vmul.f32 %v346_v29, %v320_v22 }
  0xfc   : > { %693 = vrcp.f32 %v324_v26  ;;  %v325_v28 = vadd.f32 1.0, %v323_v27  ;;  %v349_v36 = vmul.f32 %v347_v30, %v321_v25  ;;  %v350_v37 = vmul.f32 1.442695, %v348_v32 }
  0xfe   : > { %695 = vrcp.f32 %v325_v28  ;;  %v352_v42 = vmul.f32 1.442695, %v349_v36 }
  0xff   : > { %697 = vpow2.f32 %v350_v37 }
 0x100   : > { %699 = vpow2.f32 %v352_v42 }
 0x106   : > { %v694_v31 = vpop.eup %693 }
 0x107   : > { %v328_v33 = vmul.f32 1.0614054, %v694_v31 }
 0x108   : > { %v696_v34 = vpop.eup %695 }
 0x109   : > { %v330_v35 = vadd.f32 -1.4531521, %v328_v33  ;;  %v329_v38 = vmul.f32 1.0614054, %v696_v34  ;;  %v698_v53 = vpop.eup %697 }
 0x10a   : > { %v700_v57 = vpop.eup %699 }
 0x10b   : > { %v332_v39 = vmul.f32 %v694_v31, %v330_v35  ;;  %v331_v40 = vadd.f32 -1.4531521, %v329_v38 }
 0x10d   : > { %v334_v41 = vadd.f32 1.4214138, %v332_v39  ;;  %v333_v43 = vmul.f32 %v696_v34, %v331_v40 }
 0x10f   : > { %v336_v44 = vmul.f32 %v694_v31, %v334_v41  ;;  %v335_v45 = vadd.f32 1.4214138, %v333_v43 }
 0x111   : > { %v338_v46 = vadd.f32 -0.28449672, %v336_v44  ;;  %v337_v47 = vmul.f32 %v696_v34, %v335_v45 }
 0x113   : > { %v340_v48 = vmul.f32 %v694_v31, %v338_v46  ;;  %v339_v49 = vadd.f32 -0.28449672, %v337_v47 }
 0x115   : > { %v342_v50 = vadd.f32 0.2548296, %v340_v48  ;;  %v341_v51 = vmul.f32 %v696_v34, %v339_v49 }
 0x117   : > { %v344_v52 = vmul.f32 %v694_v31, %v342_v50  ;;  %v343_v54 = vadd.f32 0.2548296, %v341_v51 }
 0x119   : > { %v354_v55 = vmul.f32 %v698_v53, %v344_v52  ;;  %v345_v56 = vmul.f32 %v696_v34, %v343_v54 }
 0x11b   : > { %v356_v58 = vsub.f32 1.0, %v354_v55  ;;  %v355_v59 = vmul.f32 %v700_v57, %v345_v56 }
 0x11d   : > { %v360_v60 = vsub.f32 0.0, %v356_v58  ;;  %v357_v61 = vsub.f32 1.0, %v355_v59 }
 0x11f   : > { %v362_v62 = vsel %vm358_vm2, %v360_v60, %v356_v58  ;;  %v361_v63 = vsub.f32 0.0, %v357_v61 }
 0x120   : > { %v366_v0 = vadd.f32 1.0, %v362_v62 }
 0x121   : > { %v363_v1 = vsel %vm359_vm3, %v361_v63, %v357_v61 }
 0x122   : > { %v367_v4 = vadd.f32 1.0, %v363_v1  ;;  %v368_v5 = vmul.f32 %v366_v0, %v364_v2 }
 0x124   : > { %v369_v6 = vmul.f32 %v367_v4, %v365_v3 }
 0x126   : > { %v370_v7 = vpack.c.bf16 %v369_v6, %v368_v5 }
 0x128   : > { %634 = vmatmul.mubr.bf16.vlgmr.msra.gmra.mrb[0].mxu1 %v370_v7 }
 0x1fb   : > { %v476_v9 = vpop.f32.mrb[0].mxu1 }
 0x1fc   : > { %v477_v10 = vadd.f32 %v576_v8, %v476_v9  ;;  %v635_v11 = vpop.f32.mrb[1].mxu1 }
 0x1fd   : > { %v479_v12 = vpop.f32.mrb[2].mxu1 }
 0x1fe   : > { %484 = vst.msk [vmem:[%s218_s8] sm:$0xff] %vm483_vm4, %v477_v10  ;;  %v480_v13 = vadd.f32 %v576_v8, %v479_v12  ;;  %v636_v14 = vpop.f32.mrb[3].mxu1 }
 0x200   : > { %485 = vst.msk [vmem:[%s218_s8 + $0x8] sm:$0xff] %vm483_vm4, %v480_v13 }
 0x201   : > { %714 = shalt.err (!%p711_p3)
}
 0x202   : > { %s715_s23 = scalar_lea.hbm %s901_s13, 256  ;;  %s719_s30 = scalar_lea.hbm %s949_s5, 512 }
 0x203   : > { %p716_p4 = scmp.ne.s32.totalorder %s901_s13, %s715_s23  ;;  %p720_p9 = scmp.lt.u32.totalorder %s901_s13, %s949_s5 }
 0x204   : > { %p721_p10 = scmp.lt.u32.totalorder %s719_s30, %s715_s23  ;;  %p723_p12 = scmp.lt.u32.totalorder %s715_s23, %s901_s13 }
 0x205   : > { %p717_p7 = pnand %p716_p4, %p838_p5 }
 0x206   : > { %p722_p11 = por %p721_p10, %p720_p9 }
 0x207   : > { %p718_p8 = pneg %p717_p7 }
 0x208   : > { %p724_p13 = por %p723_p12, %p722_p11 }
 0x20a   : > { %p725_p0 = pnand %p724_p13, %p718_p8 }
 0x20c   : > { %728 = shalt.err (!%p725_p0)
}
 0x20d   : > { %s768_s8 = smov 128   ;;  %s769_s10 = smov 8  }
 0x20e   : > { %637 = dma.vmem_to_hbm [thread:$0]  (%p838_p5), %s896_s9, 256, %s901_s13, %s903_s22, %s768_s8, %s768_s8, %s769_s10  }
 0x20f PF: > { %p643_p1 = scmp.ge.s32.totalorder %s763_s21, 2  ;;  %s515_s11 = sand.u32 1, %s751_s18  }
 0x210   : > { %s516_s12 = scalar_lea.sflag [#allocation3], %s515_s11 }
 0x211   : > { %p640_p2 = pnand %p643_p1, %p842_p6 }
 0x213   : > { %746 = dma.done.wait (!%p640_p2), %s516_s12, 256  }
 0x214   : > { %748 = vsyncadd (!%p640_p2), %s516_s12, 4294967040  ;;  %p15_p3 = scmp.ge.s32.totalorder %s825_s24, 4   ;;  %s952_s18 = smov %s755_s19 }
 0x215   : > { %s953_s19 = smov %s759_s20  ;;  %s954_s20 = smov %s836_s27 }
 0x216   : > { %s955_s21 = smov %s825_s24  ;;  %17 = sbr.rel (!%p15_p3) target bundleno = 3 (0x3), region = 75 }
 0x21d   :  { %521 = vsyncpa [#allocation3], 1 }
 0x21e   :  { %523 = vsyncpa [#allocation3 + $0x1], 1 }

</bundles_post_ra>
